<compile_context>
chip_gen: v7x
topology: tpu7x:2x2x1
jax: 0.10.0
libtpu: 0.0.40
codegen_flags: <defaults>
</compile_context>

<pallas_src>
import functools

import jax
import jax.numpy as jnp
from jax.experimental import pallas as pl
from jax.experimental.pallas import tpu as pltpu


def _mlp_stack_kernel(x_ref, w1t_ref, b1_ref, w2t_ref, b2_ref, o_ref):
    """o[:, k, :] = Linear2(Linear1(x)) for k in {0,1,2} (== stack(dim=1)+flatten(1))."""
    x = x_ref[...]
    # Weights arrive pre-transposed as (in, out): both dots contract the natural
    # last dim and feed the MXU directly (no in-kernel XLU transpose).
    y1 = jnp.dot(x, w1t_ref[...], preferred_element_type=jnp.float32) + b1_ref[...]
    y2 = jnp.dot(y1, w2t_ref[...], preferred_element_type=jnp.float32) + b2_ref[...]
    y2 = y2.astype(o_ref.dtype)  # cast once into a local before the stores
    # Three lane-dense slab stores (each replica starts at lane 0 of its own slab).
    o_ref[:, 0, :] = y2
    o_ref[:, 1, :] = y2
    o_ref[:, 2, :] = y2


def prepare_params(w1, b1, w2, b2):
    """One-time layout prep, hoisted out of the per-call hot path.

    PyTorch Linear stores W as (out, in); the kernel wants (in, out) so the MXU
    contracts the last dim. Biases become (1, out) rows so everything is >= 2D.
    """
    w1t = jnp.transpose(w1)
    w2t = jnp.transpose(w2)
    b1r = jnp.reshape(b1, (1, -1))
    b2r = jnp.reshape(b2, (1, -1))
    return w1t, b1r, w2t, b2r


def _pick_batch_tile(batch):
    # Small batch: one grid point holding the whole batch (full-dim block is always
    # legal). Large batch: 512-row tiles (multiple of 8 sublanes) -> measured ~85%
    # of HBM roofline for tiled mem-bound kernels, and VMEM stays tile-bounded.
    return batch if batch <= 512 else 512


@jax.jit
def model_forward(x, w1t, b1r, w2t, b2r):
    """y = Linear2(Linear1(x)); return flatten(stack((y,y,y), dim=1), 1)."""
    batch, in_f = x.shape
    hid = w1t.shape[1]
    out_f = w2t.shape[1]
    tm = _pick_batch_tile(batch)
    grid = (pl.cdiv(batch, tm),)

    # Explicit VMEM budget (generation-aware: leaves headroom under v7x's 64 MiB
    # physical / 32 MiB default scoped limit). 2x for double-buffered streaming
    # tiles, plus resident weights/biases and in-flight temporaries.
    itemsize = 4
    stream_bytes = 2 * (tm * in_f + tm * 3 * out_f) * itemsize
    resident_bytes = (in_f * hid + hid * out_f + hid + out_f) * itemsize
    temp_bytes = 2 * tm * max(hid, out_f) * itemsize
    vmem_budget = int(min(max(2 * (stream_bytes + resident_bytes + temp_bytes),
                              4 << 20), 32 << 20))

    out3 = pl.pallas_call(
        _mlp_stack_kernel,
        out_shape=jax.ShapeDtypeStruct((batch, 3, out_f), jnp.float32),
        grid=grid,
        in_specs=[
            pl.BlockSpec((tm, in_f), lambda i: (i, 0)),      # x: streamed per batch tile
            pl.BlockSpec((in_f, hid), lambda i: (0, 0)),     # W1^T: resident
            pl.BlockSpec((1, hid), lambda i: (0, 0)),        # b1:   resident
            pl.BlockSpec((hid, out_f), lambda i: (0, 0)),    # W2^T: resident
            pl.BlockSpec((1, out_f), lambda i: (0, 0)),      # b2:   resident
        ],
        out_specs=pl.BlockSpec((tm, 3, out_f), lambda i: (i, 0, 0)),
        compiler_params=pltpu.CompilerParams(
            dimension_semantics=("parallel",),   # batch tiles are independent (v7x megacore)
            vmem_limit_bytes=vmem_budget,
        ),
    )(x, w1t, b1r, w2t, b2r)

    # (B, 3, OUT) -> (B, 3*OUT): contiguous, free reshape in the wrapper.
    return jnp.reshape(out3, (batch, 3 * out_f))


if __name__ == "__main__":
    key = jax.random.PRNGKey(0)
    kx, k1w, k1b, k2w, k2b = jax.random.split(key, 5)

    B, IN, OUT = 2, 2, 2
    x = jax.random.normal(kx, (B, IN), dtype=jnp.float32)

    # Deterministic "Linear" params with PyTorch-style shapes: W (out, in), b (out,)
    bound1 = 1.0 / jnp.sqrt(IN)
    w1 = jax.random.uniform(k1w, (OUT, IN), minval=-bound1, maxval=bound1, dtype=jnp.float32)
    b1 = jax.random.uniform(k1b, (OUT,), minval=-bound1, maxval=bound1, dtype=jnp.float32)
    bound2 = 1.0 / jnp.sqrt(OUT)
    w2 = jax.random.uniform(k2w, (OUT, OUT), minval=-bound2, maxval=bound2, dtype=jnp.float32)
    b2 = jax.random.uniform(k2b, (OUT,), minval=-bound2, maxval=bound2, dtype=jnp.float32)

    # One-time parameter layout prep (not part of the per-call hot path).
    w1t, b1r, w2t, b2r = prepare_params(w1, b1, w2, b2)

    out = jax.block_until_ready(model_forward(x, w1t, b1r, w2t, b2r))

    # Plain-JAX reference with identical semantics to the PyTorch module.
    y_ref = x @ w1.T + b1[None, :]
    y_ref = y_ref @ w2.T + b2[None, :]
    ref = jnp.reshape(jnp.stack([y_ref, y_ref, y_ref], axis=1), (B, 3 * OUT))
    assert out.shape == (B, 3 * OUT)
    assert jnp.allclose(out, ref, atol=1e-5, rtol=1e-5)

    print("KERNEL_OK")
</pallas_src>

<mosaic_0001>
module attributes {stable_mosaic.version = 11 : i64} {
  func.func @_mlp_stack_kernel(%arg0: i32, %arg1: memref<2x2xf32, #tpu.memory_space<vmem>>, %arg2: memref<2x2xf32, #tpu.memory_space<vmem>>, %arg3: memref<1x2xf32, #tpu.memory_space<vmem>>, %arg4: memref<2x2xf32, #tpu.memory_space<vmem>>, %arg5: memref<1x2xf32, #tpu.memory_space<vmem>>, %arg6: memref<2x3x2xf32, #tpu.memory_space<vmem>>) attributes {dimension_semantics = [#tpu.dimension_semantics<parallel>], iteration_bounds = array<i64: 1>, scalar_prefetch = 0 : i64, scratch_operands = 0 : i64, tpu.core_type = #tpu.core_type<tc>, window_params = [{transform_indices = @transform_0, window_bounds = array<i64: 2, 2>}, {pipeline_mode = #tpu.pipeline_mode<synchronous>, transform_indices = @transform_1, window_bounds = array<i64: 2, 2>}, {pipeline_mode = #tpu.pipeline_mode<synchronous>, transform_indices = @transform_2, window_bounds = array<i64: 1, 2>}, {pipeline_mode = #tpu.pipeline_mode<synchronous>, transform_indices = @transform_3, window_bounds = array<i64: 2, 2>}, {pipeline_mode = #tpu.pipeline_mode<synchronous>, transform_indices = @transform_4, window_bounds = array<i64: 1, 2>}, {transform_indices = @transform_5, window_bounds = array<i64: 2, 3, 2>}]} {
    %c0 = arith.constant 0 : index
    %c0_0 = arith.constant 0 : index
    %0 = vector.load %arg1[%c0, %c0_0] : memref<2x2xf32, #tpu.memory_space<vmem>>, vector<2x2xf32>
    %c0_1 = arith.constant 0 : index
    %c0_2 = arith.constant 0 : index
    %1 = vector.load %arg2[%c0_1, %c0_2] : memref<2x2xf32, #tpu.memory_space<vmem>>, vector<2x2xf32>
    %cst = arith.constant dense<0.000000e+00> : vector<2x2xf32>
    %2 = tpu.matmul %0, %1, %cst {dimension_numbers = #tpu.dot_dimension_numbers<[1], [0], [0], [1], [0, 0, 1, 1], [], []>} : vector<2x2xf32>, vector<2x2xf32>, vector<2x2xf32> -> vector<2x2xf32>
    %c0_3 = arith.constant 0 : index
    %c0_4 = arith.constant 0 : index
    %3 = vector.load %arg3[%c0_3, %c0_4] : memref<1x2xf32, #tpu.memory_space<vmem>>, vector<1x2xf32>
    %4 = vector.broadcast %3 : vector<1x2xf32> to vector<2x2xf32>
    %5 = arith.addf %2, %4 : vector<2x2xf32>
    %c0_5 = arith.constant 0 : index
    %c0_6 = arith.constant 0 : index
    %6 = vector.load %arg4[%c0_5, %c0_6] : memref<2x2xf32, #tpu.memory_space<vmem>>, vector<2x2xf32>
    %cst_7 = arith.constant dense<0.000000e+00> : vector<2x2xf32>
    %7 = tpu.matmul %5, %6, %cst_7 {dimension_numbers = #tpu.dot_dimension_numbers<[1], [0], [0], [1], [0, 0, 1, 1], [], []>} : vector<2x2xf32>, vector<2x2xf32>, vector<2x2xf32> -> vector<2x2xf32>
    %c0_8 = arith.constant 0 : index
    %c0_9 = arith.constant 0 : index
    %8 = vector.load %arg5[%c0_8, %c0_9] : memref<1x2xf32, #tpu.memory_space<vmem>>, vector<1x2xf32>
    %9 = vector.broadcast %8 : vector<1x2xf32> to vector<2x2xf32>
    %10 = arith.addf %7, %9 : vector<2x2xf32>
    %c0_10 = arith.constant 0 : index
    %c0_11 = arith.constant 0 : index
    %c0_12 = arith.constant 0 : index
    %11 = vector.load %arg6[%c0_10, %c0_11, %c0_12] : memref<2x3x2xf32, #tpu.memory_space<vmem>>, vector<2x1x2xf32>
    %12 = vector.shape_cast %11 : vector<2x1x2xf32> to vector<2x2xf32>
    %13 = vector.shape_cast %10 : vector<2x2xf32> to vector<2x1x2xf32>
    tpu.vector_store %arg6[%c0_10, %c0_11, %c0_12], %13 {strides = array<i32>} : memref<2x3x2xf32, #tpu.memory_space<vmem>>, vector<2x1x2xf32>,
    %c0_13 = arith.constant 0 : index
    %c1 = arith.constant 1 : index
    %c0_14 = arith.constant 0 : index
    %14 = vector.load %arg6[%c0_13, %c1, %c0_14] : memref<2x3x2xf32, #tpu.memory_space<vmem>>, vector<2x1x2xf32>
    %15 = vector.shape_cast %14 : vector<2x1x2xf32> to vector<2x2xf32>
    %16 = vector.shape_cast %10 : vector<2x2xf32> to vector<2x1x2xf32>
    tpu.vector_store %arg6[%c0_13, %c1, %c0_14], %16 {strides = array<i32>} : memref<2x3x2xf32, #tpu.memory_space<vmem>>, vector<2x1x2xf32>,
    %c0_15 = arith.constant 0 : index
    %c2 = arith.constant 2 : index
    %c0_16 = arith.constant 0 : index
    %17 = vector.load %arg6[%c0_15, %c2, %c0_16] : memref<2x3x2xf32, #tpu.memory_space<vmem>>, vector<2x1x2xf32>
    %18 = vector.shape_cast %17 : vector<2x1x2xf32> to vector<2x2xf32>
    %19 = vector.shape_cast %10 : vector<2x2xf32> to vector<2x1x2xf32>
    tpu.vector_store %arg6[%c0_15, %c2, %c0_16], %19 {strides = array<i32>} : memref<2x3x2xf32, #tpu.memory_space<vmem>>, vector<2x1x2xf32>,
    return
  }
  func.func @transform_0(%arg0: i32) -> (i32, i32) {
    %c0_i32 = arith.constant 0 : i32
    %c0_i32_0 = arith.constant 0 : i32
    return %arg0, %c0_i32 : i32, i32
  }
  func.func @transform_1(%arg0: i32) -> (i32, i32) {
    %c0_i32 = arith.constant 0 : i32
    %c0_i32_0 = arith.constant 0 : i32
    %c0_i32_1 = arith.constant 0 : i32
    return %c0_i32, %c0_i32_0 : i32, i32
  }
  func.func @transform_2(%arg0: i32) -> (i32, i32) {
    %c0_i32 = arith.constant 0 : i32
    %c0_i32_0 = arith.constant 0 : i32
    %c0_i32_1 = arith.constant 0 : i32
    return %c0_i32, %c0_i32_0 : i32, i32
  }
  func.func @transform_3(%arg0: i32) -> (i32, i32) {
    %c0_i32 = arith.constant 0 : i32
    %c0_i32_0 = arith.constant 0 : i32
    %c0_i32_1 = arith.constant 0 : i32
    return %c0_i32, %c0_i32_0 : i32, i32
  }
  func.func @transform_4(%arg0: i32) -> (i32, i32) {
    %c0_i32 = arith.constant 0 : i32
    %c0_i32_0 = arith.constant 0 : i32
    %c0_i32_1 = arith.constant 0 : i32
    return %c0_i32, %c0_i32_0 : i32, i32
  }
  func.func @transform_5(%arg0: i32) -> (i32, i32, i32) {
    %c0_i32 = arith.constant 0 : i32
    %c0_i32_0 = arith.constant 0 : i32
    %c0_i32_1 = arith.constant 0 : i32
    return %arg0, %c0_i32, %c0_i32_0 : i32, i32, i32
  }
}

</mosaic_0001>

<bundles_post_ra>
// kernel: model_forward.1
= control target key start
LH: loop header
LB: loop body
LE: loop exit
PB: predicated region body
PF: predicated region fallthrough
CT: control target
= control target key end

     0   :  { %10 = vsyncpa [#allocation3], 0  ;;  %s288_s18 = smov [#allocation2]   ;;  %s364_s0 = inlined_call_operand.hbm [shape: f32[2,2], index: 0, kind: input, shape index: {}]   ;;  %s365_s1 = inlined_call_operand.vmem [shape: f32[2,2], index: 1, kind: input, shape index: {}]   ;;  %s366_s2 = inlined_call_operand.vmem [shape: f32[1,2], index: 2, kind: input, shape index: {}]   ;;  %s367_s3 = inlined_call_operand.vmem [shape: f32[2,2], index: 3, kind: input, shape index: {}]   ;;  %s368_s4 = inlined_call_operand.vmem [shape: f32[1,2], index: 4, kind: input, shape index: {}]   ;;  %s369_s5 = inlined_call_operand.vmem [shape: f32[2,3,2], index: 5, kind: output, shape index: {}]  }
   0x1   :  { %s17_s19 = sshll.u32 %s288_s18, 4  ;;  %s264_s22 = scalar_lea.hbm %s364_s0, 32  ;;  %s18_s19 = int_to_ptr.vmem [resolvable:$true] %s17_s19 }
   0x2   :  { %p265_p0 = scmp.ne.s32.totalorder %s364_s0, %s264_s22  ;;  %p268_p1 = scmp.lt.u32.totalorder %s264_s22, %s364_s0 }
   0x4   :  { %p270_p2 = pnand %p268_p1, %p265_p0 }
   0x6   :  { %273 = shalt.err (!%p270_p2)
}
   0x7   :  { %s274_s27 = scalar_lea.vmem %s18_s19, 32  ;;  %p279_p4 = scmp.lt.s32.totalorder %s18_s19, %s18_s19 }
   0x8   :  { %p275_p3 = scmp.ne.s32.totalorder %s18_s19, %s274_s27  ;;  %p280_p5 = scmp.lt.s32.totalorder %s274_s27, %s274_s27 }
   0xa   :  { %p281_p6 = por %p280_p5, %p279_p4 }
   0xc   :  { %p282_p7 = pnand %p281_p6, %p275_p3 }
   0xe   :  { %285 = shalt.err (!%p282_p7)
}
   0xf   :  { %20 = dma.hbm_to_vmem [thread:$0]  %s364_s0, 32, %s18_s19, [#allocation3]  }
  0x10   :  { %286 = dma.done.wait [#allocation3], 32  }
  0x11   :  { %287 = vsyncadd [#allocation3], 4294967264  ;;  %v289_v0 = vmov 0.0   ;;  %vm290_vm0 = vmmov 0   ;;  %vm45_vm1 = vcmask 1041408   ;;  %vm41_vm2 = vcmask 15360  }
  0x12   :  { %250 = vmatprep.subr.mxu0 %v289_v0  ;;  %252 = vmatprep.mubr.msk.f32.mxu0 %vm290_vm0, %v289_v0  ;;  %v33_v1 = vld [vmem:[%s365_s1] sm:$0x3]  ;;  %v291_v8 = vmov 1966171168   ;;  %v207_v10 = vlaneseq  ;;  %vm228_vm3 = vcmask 8192  }
  0x13   :  { %255 = vmatprep.subr.mxu1 %v289_v0  ;;  %257 = vmatprep.mubr.msk.f32.mxu1 %vm290_vm0, %v289_v0  ;;  %v32_v2 = vld [vmem:[#allocation2] sm:$0x3]  ;;  %v205_v9 = vunpack.c.l.s4 %v291_v8 }
  0x14   :  { %251 = vmatpush3.msk.msra.mxu0 %vm45_vm1, %v33_v1  ;;  %v119_v3 = vld [vmem:[%s367_s3] sm:$0x3]  ;;  %v208_v12 = vshrl.u32 %v207_v10, 7 }
  0x15   :  { %253 = vmatmul.mubr.msk.f32.vlgmr.msra.gmra.mrb[0].mxu0 %vm41_vm2, %v32_v2  ;;  %256 = vmatpush3.msk.msra.mxu1 %vm45_vm1, %v119_v3  ;;  %v240_v4 = vld [vmem:[%s366_s2] ss:$0 sm:$0xff]  ;;  %v206_v11 = vunpack.c.0.s8 %v205_v9 }
  0x16   :  { %v243_v13 = vld [vmem:[%s368_s4] ss:$0 sm:$0xff] }
  0x17   :  { %v209_v14 = vsub.s32 %v206_v11, %v208_v12 }
  0xe8   :  { %v115_v5 = vpop.f32.mrb[0].mxu0 }
  0xe9   :  { %v116_v6 = vadd.f32 %v240_v4, %v115_v5  ;;  %v254_v7 = vpop.f32.mrb[1].mxu0 }
  0xeb   :  { %258 = vmatmul.mubr.msk.f32.vlgmr.msra.gmra.mrb[0].mxu1 %vm41_vm2, %v116_v6 }
 0x1be   :  { %v199_v15 = vpop.f32.mrb[0].mxu1 }
 0x1bf   :  { %v200_v16 = vadd.f32 %v243_v13, %v199_v15  ;;  %v259_v17 = vpop.f32.mrb[1].mxu1 }
 0x1c1   :  { %v210_v18 = vrot.slane %v200_v16, %v209_v14 }
 0x1c3   :  { %v211_v19 = vcombine.high %v210_v18, %v210_v18  ;;  %v218_v20 = vrot.slane %v210_v18, %v209_v14 }
 0x1c5   :  { %v225_v21 = vrot.slane %v211_v19, %v209_v14  ;;  %229 = vst.msk [vmem:[%s369_s5] sm:$0x1] %vm228_vm3, %v218_v20  ;;  %231 = vst.msk [vmem:[%s369_s5 + $0x1] sm:$0x1] %vm228_vm3, %v218_v20 }
 0x1c6   :  { %233 = vst.msk [vmem:[%s369_s5 + $0x2] sm:$0x1] %vm228_vm3, %v218_v20 }
 0x1c7   :  { %230 = vst.msk [vmem:[%s369_s5 + $0x4] sm:$0x1] %vm228_vm3, %v225_v21  ;;  %232 = vst.msk [vmem:[%s369_s5 + $0x5] sm:$0x1] %vm228_vm3, %v225_v21 }
 0x1c8   :  { %234 = vst.msk [vmem:[%s369_s5 + $0x6] sm:$0x1] %vm228_vm3, %v225_v21 }
 0x1c9   :  { %239 = vsyncpa [#allocation3], 1 }

</bundles_post_ra>
